<compile_context>
chip_gen: v7x
topology: tpu7x:2x2x1
jax: 0.10.0
libtpu: 0.0.40
codegen_flags: <defaults>
</compile_context>

<pallas_src>
import jax
import jax.numpy as jnp
from jax.experimental import pallas as pl
from jax.experimental.pallas import tpu as pltpu


def latent_block_kernel(x_ref, w_ref, b_ref, out_ref):
    # x_ref:   (bn, C, HW) f32  -- NCHW reshaped, no transpose
    # w_ref:   (C, Wp)     f32  -- both heads fused, zero-padded to 128-lane multiple
    # b_ref:   (1, Wp)     f32
    # out_ref: (bn, Wp)    f32
    x = x_ref[...]
    # AdaptiveAvgPool2d((1,1)) + Flatten  ->  mean over the spatial (lane) axis.
    pooled = jnp.mean(x, axis=-1)                        # (bn, C), XLU lane reduce

    C = x.shape[1]
    if C <= 8:
        # Tiny contraction (K = C): unrolled VPU broadcast-FMAs instead of an MXU
        # push/pop — removes MXU drain latency from this latency-bound kernel.
        acc = jnp.zeros(out_ref.shape, jnp.float32)
        for c in range(C):                               # static, fully unrolled
            acc = acc + pooled[:, c:c + 1] * w_ref[c:c + 1, :]
        out_ref[...] = acc + b_ref[...]
    else:
        # Larger C: single fused MXU matmul for both heads.
        out_ref[...] = jnp.dot(pooled, w_ref[...],
                               preferred_element_type=jnp.float32) + b_ref[...]


def latent_block(x_nchw, w_mu, b_mu, w_logvar, b_logvar):
    """x_nchw: (N, C, H, W); w_*: (latent_dim, C) PyTorch convention; b_*: (latent_dim,)."""
    N, C, H, W = x_nchw.shape
    L = w_mu.shape[0]
    HW = H * W
    two_l = 2 * L

    # Pure reshape of contiguous NCHW — no transpose / no extra HBM pass.
    x = x_nchw.reshape(N, C, HW).astype(jnp.float32)

    # Fuse the two heads: (C, 2L) weight, (1, 2L) bias -> one matmul / one store stream.
    w_cat = jnp.concatenate(
        [jnp.transpose(w_mu), jnp.transpose(w_logvar)], axis=1).astype(jnp.float32)   # (C, 2L)
    b_cat = jnp.concatenate([b_mu, b_logvar]).reshape(1, two_l).astype(jnp.float32)   # (1, 2L)

    # Pad the fused lane axis up to a multiple of 128 so the output store is
    # unmasked (lane-dense).  Padded columns are zero and sliced off below.
    wp = max(128, ((two_l + 127) // 128) * 128)
    if wp != two_l:
        w_cat = jnp.pad(w_cat, ((0, 0), (0, wp - two_l)))
        b_cat = jnp.pad(b_cat, ((0, 0), (0, wp - two_l)))

    # One block covers the whole (tiny) problem; batch grid kept for scalability.
    bn = N if N <= 512 else 512
    grid = (pl.cdiv(N, bn),)

    out = pl.pallas_call(
        latent_block_kernel,
        out_shape=jax.ShapeDtypeStruct((N, wp), jnp.float32),
        grid=grid,
        in_specs=[
            pl.BlockSpec((bn, C, HW), lambda i: (i, 0, 0)),
            pl.BlockSpec((C, wp), lambda i: (0, 0)),
            pl.BlockSpec((1, wp), lambda i: (0, 0)),
        ],
        out_specs=pl.BlockSpec((bn, wp), lambda i: (i, 0)),
        compiler_params=pltpu.CompilerParams(dimension_semantics=("parallel",)),
    )(x, w_cat, b_cat)

    mu = out[:, :L]
    logvar = out[:, L:two_l]
    return mu, logvar


if __name__ == "__main__":
    # Small shapes consistent with the module: batch=2, in_channels=4,
    # spatial=16x16, latent_dim=32.
    N, C, H, W, L = 2, 4, 16, 16, 32

    key = jax.random.PRNGKey(0)
    kx, kwm, kbm, kwl, kbl = jax.random.split(key, 5)

    x = jax.random.normal(kx, (N, C, H, W), dtype=jnp.float32)

    # Deterministic parameter init (PyTorch Linear default: U(-1/sqrt(C), 1/sqrt(C))).
    bound = 1.0 / float(jnp.sqrt(jnp.float32(C)))
    w_mu = jax.random.uniform(kwm, (L, C), minval=-bound, maxval=bound, dtype=jnp.float32)
    b_mu = jax.random.uniform(kbm, (L,), minval=-bound, maxval=bound, dtype=jnp.float32)
    w_logvar = jax.random.uniform(kwl, (L, C), minval=-bound, maxval=bound, dtype=jnp.float32)
    b_logvar = jax.random.uniform(kbl, (L,), minval=-bound, maxval=bound, dtype=jnp.float32)

    mu, logvar = latent_block(x, w_mu, b_mu, w_logvar, b_logvar)
    jax.block_until_ready((mu, logvar))

    # Reference check in plain JAX (same math as the PyTorch forward).
    pooled_ref = jnp.mean(x, axis=(2, 3))                       # (N, C)
    mu_ref = pooled_ref @ w_mu.T + b_mu
    lv_ref = pooled_ref @ w_logvar.T + b_logvar
    assert mu.shape == (N, L) and logvar.shape == (N, L)
    assert jnp.allclose(mu, mu_ref, atol=1e-5), "mu mismatch"
    assert jnp.allclose(logvar, lv_ref, atol=1e-5), "logvar mismatch"

    print("KERNEL_OK")
</pallas_src>

<mosaic_0001>
module attributes {stable_mosaic.version = 11 : i64} {
  func.func @latent_block_kernel(%arg0: i32, %arg1: memref<2x4x256xf32, #tpu.memory_space<vmem>>, %arg2: memref<4x128xf32, #tpu.memory_space<vmem>>, %arg3: memref<1x128xf32, #tpu.memory_space<vmem>>, %arg4: memref<2x128xf32, #tpu.memory_space<vmem>>) attributes {dimension_semantics = [#tpu.dimension_semantics<parallel>], iteration_bounds = array<i64: 1>, scalar_prefetch = 0 : i64, scratch_operands = 0 : i64, tpu.core_type = #tpu.core_type<tc>, window_params = [{transform_indices = @transform_0, window_bounds = array<i64: 2, 4, 256>}, {pipeline_mode = #tpu.pipeline_mode<synchronous>, transform_indices = @transform_1, window_bounds = array<i64: 4, 128>}, {pipeline_mode = #tpu.pipeline_mode<synchronous>, transform_indices = @transform_2, window_bounds = array<i64: 1, 128>}, {transform_indices = @transform_3, window_bounds = array<i64: 2, 128>}]} {
    %c0 = arith.constant 0 : index
    %c0_0 = arith.constant 0 : index
    %c0_1 = arith.constant 0 : index
    %0 = vector.load %arg1[%c0, %c0_0, %c0_1] : memref<2x4x256xf32, #tpu.memory_space<vmem>>, vector<2x4x256xf32>
    %cst = arith.constant dense<0.000000e+00> : vector<2x4xf32>
    %1 = vector.multi_reduction <add>, %0, %cst [2] : vector<2x4x256xf32> to vector<2x4xf32>
    %cst_2 = arith.constant 2.560000e+02 : f32
    %2 = vector.broadcast %cst_2 : f32 to vector<2x4xf32>
    %3 = arith.divf %1, %2 : vector<2x4xf32>
    %cst_3 = arith.constant 0.000000e+00 : f32
    %4 = vector.broadcast %cst_3 : f32 to vector<2x128xf32>
    %5 = vector.extract_strided_slice %3 {offsets = [0, 0], sizes = [2, 1], strides = [1, 1]} : vector<2x4xf32> to vector<2x1xf32>
    %c0_4 = arith.constant 0 : index
    %c0_5 = arith.constant 0 : index
    %6 = vector.load %arg2[%c0_4, %c0_5] : memref<4x128xf32, #tpu.memory_space<vmem>>, vector<1x128xf32>
    %7 = vector.broadcast %5 : vector<2x1xf32> to vector<2x128xf32>
    %8 = vector.broadcast %6 : vector<1x128xf32> to vector<2x128xf32>
    %9 = arith.mulf %7, %8 : vector<2x128xf32>
    %10 = arith.addf %4, %9 : vector<2x128xf32>
    %11 = vector.extract_strided_slice %3 {offsets = [0, 1], sizes = [2, 1], strides = [1, 1]} : vector<2x4xf32> to vector<2x1xf32>
    %c1 = arith.constant 1 : index
    %c0_6 = arith.constant 0 : index
    %12 = vector.load %arg2[%c1, %c0_6] : memref<4x128xf32, #tpu.memory_space<vmem>>, vector<1x128xf32>
    %13 = vector.broadcast %11 : vector<2x1xf32> to vector<2x128xf32>
    %14 = vector.broadcast %12 : vector<1x128xf32> to vector<2x128xf32>
    %15 = arith.mulf %13, %14 : vector<2x128xf32>
    %16 = arith.addf %10, %15 : vector<2x128xf32>
    %17 = vector.extract_strided_slice %3 {offsets = [0, 2], sizes = [2, 1], strides = [1, 1]} : vector<2x4xf32> to vector<2x1xf32>
    %c2 = arith.constant 2 : index
    %c0_7 = arith.constant 0 : index
    %18 = vector.load %arg2[%c2, %c0_7] : memref<4x128xf32, #tpu.memory_space<vmem>>, vector<1x128xf32>
    %19 = vector.broadcast %17 : vector<2x1xf32> to vector<2x128xf32>
    %20 = vector.broadcast %18 : vector<1x128xf32> to vector<2x128xf32>
    %21 = arith.mulf %19, %20 : vector<2x128xf32>
    %22 = arith.addf %16, %21 : vector<2x128xf32>
    %23 = vector.extract_strided_slice %3 {offsets = [0, 3], sizes = [2, 1], strides = [1, 1]} : vector<2x4xf32> to vector<2x1xf32>
    %c3 = arith.constant 3 : index
    %c0_8 = arith.constant 0 : index
    %24 = vector.load %arg2[%c3, %c0_8] : memref<4x128xf32, #tpu.memory_space<vmem>>, vector<1x128xf32>
    %25 = vector.broadcast %23 : vector<2x1xf32> to vector<2x128xf32>
    %26 = vector.broadcast %24 : vector<1x128xf32> to vector<2x128xf32>
    %27 = arith.mulf %25, %26 : vector<2x128xf32>
    %28 = arith.addf %22, %27 : vector<2x128xf32>
    %c0_9 = arith.constant 0 : index
    %c0_10 = arith.constant 0 : index
    %29 = vector.load %arg3[%c0_9, %c0_10] : memref<1x128xf32, #tpu.memory_space<vmem>>, vector<1x128xf32>
    %30 = vector.broadcast %29 : vector<1x128xf32> to vector<2x128xf32>
    %31 = arith.addf %28, %30 : vector<2x128xf32>
    %c0_11 = arith.constant 0 : index
    %c0_12 = arith.constant 0 : index
    %32 = vector.load %arg4[%c0_11, %c0_12] : memref<2x128xf32, #tpu.memory_space<vmem>>, vector<2x128xf32>
    tpu.vector_store %arg4[%c0_11, %c0_12], %31 {strides = array<i32>} : memref<2x128xf32, #tpu.memory_space<vmem>>, vector<2x128xf32>,
    return
  }
  func.func @transform_0(%arg0: i32) -> (i32, i32, i32) {
    %c0_i32 = arith.constant 0 : i32
    %c0_i32_0 = arith.constant 0 : i32
    %c0_i32_1 = arith.constant 0 : i32
    return %arg0, %c0_i32, %c0_i32_0 : i32, i32, i32
  }
  func.func @transform_1(%arg0: i32) -> (i32, i32) {
    %c0_i32 = arith.constant 0 : i32
    %c0_i32_0 = arith.constant 0 : i32
    %c0_i32_1 = arith.constant 0 : i32
    return %c0_i32, %c0_i32_0 : i32, i32
  }
  func.func @transform_2(%arg0: i32) -> (i32, i32) {
    %c0_i32 = arith.constant 0 : i32
    %c0_i32_0 = arith.constant 0 : i32
    %c0_i32_1 = arith.constant 0 : i32
    return %c0_i32, %c0_i32_0 : i32, i32
  }
  func.func @transform_3(%arg0: i32) -> (i32, i32) {
    %c0_i32 = arith.constant 0 : i32
    %c0_i32_0 = arith.constant 0 : i32
    return %arg0, %c0_i32 : i32, i32
  }
}

</mosaic_0001>

<bundles_post_ra>
// kernel: tpu_custom_call.1
= control target key start
LH: loop header
LB: loop body
LE: loop exit
PB: predicated region body
PF: predicated region fallthrough
CT: control target
= control target key end

     0   :  { %8 = vsyncpa [#allocation3], 0  ;;  %s1889_s0 = inlined_call_operand.hbm [shape: f32[2,4,256], index: 0, kind: input, shape index: {}]   ;;  %s1890_s1 = inlined_call_operand.hbm [shape: f32[4,128], index: 1, kind: input, shape index: {}]   ;;  %s1891_s2 = inlined_call_operand.vmem [shape: f32[1,128], index: 2, kind: input, shape index: {}]   ;;  %s1892_s3 = inlined_call_operand.hbm [shape: f32[2,128], index: 3, kind: output, shape index: {}]  }
   0x1   :  { %9 = vsyncpa [#allocation6], 0 }
   0x2   :  { %10 = vsyncpa [#allocation4], 0  ;;  %s1233_s12 = smov [#allocation2]   ;;  %s1161_s16 = scalar_lea.hbm %s1889_s0, 256 }
   0x3   :  { %s16_s13 = sshll.u32 %s1233_s12, 4  ;;  %p1162_p0 = scmp.ne.s32.totalorder %s1889_s0, %s1161_s16  ;;  %s17_s13 = int_to_ptr.vmem [resolvable:$true] %s16_s13 }
   0x4   :  { %p1165_p1 = scmp.lt.u32.totalorder %s1161_s16, %s1889_s0 }
   0x6   :  { %p1167_p2 = pnand %p1165_p1, %p1162_p0 }
   0x8   :  { %1170 = shalt.err (!%p1167_p2)
}
   0x9   :  { %s1171_s21 = scalar_lea.vmem %s17_s13, 256  ;;  %p1176_p4 = scmp.lt.s32.totalorder %s17_s13, %s17_s13 }
   0xa   :  { %p1172_p3 = scmp.ne.s32.totalorder %s17_s13, %s1171_s21  ;;  %p1177_p5 = scmp.lt.s32.totalorder %s1171_s21, %s1171_s21 }
   0xc   :  { %p1178_p6 = por %p1177_p5, %p1176_p4 }
   0xe   :  { %p1179_p7 = pnand %p1178_p6, %p1172_p3 }
  0x10   :  { %1182 = shalt.err (!%p1179_p7)
}
  0x11   :  { %s1234_s22 = smov 128   ;;  %s1235_s23 = smov 8  }
  0x12   :  { %22 = dma.hbm_to_vmem [thread:$0]  %s1889_s0, 256, %s17_s13, [#allocation3], %s1234_s22, %s1234_s22, %s1235_s23  }
  0x13   :  { %s1236_s26 = smov [#allocation5]   ;;  %s1183_s30 = scalar_lea.hbm %s1890_s1, 64 }
  0x14   :  { %s29_s27 = sshll.u32 %s1236_s26, 4  ;;  %p1184_p8 = scmp.ne.s32.totalorder %s1890_s1, %s1183_s30  ;;  %s30_s27 = int_to_ptr.vmem [resolvable:$true] %s29_s27 }
  0x15   :  { %p1187_p9 = scmp.lt.u32.totalorder %s1183_s30, %s1890_s1 }
  0x17   :  { %p1189_p10 = pnand %p1187_p9, %p1184_p8 }
  0x19   :  { %1192 = shalt.err (!%p1189_p10)
}
  0x1a   :  { %s1193_s8 = scalar_lea.vmem %s30_s27, 64  ;;  %p1198_p12 = scmp.lt.s32.totalorder %s30_s27, %s30_s27 }
  0x1b   :  { %p1194_p11 = scmp.ne.s32.totalorder %s30_s27, %s1193_s8  ;;  %p1199_p13 = scmp.lt.s32.totalorder %s1193_s8, %s1193_s8 }
  0x1d   :  { %p1200_p0 = por %p1199_p13, %p1198_p12 }
  0x1f   :  { %p1201_p1 = pnand %p1200_p0, %p1194_p11 }
  0x21   :  { %1204 = shalt.err (!%p1201_p1)
}
  0x22   :  { %32 = dma.hbm_to_vmem [thread:$0]  %s1890_s1, 64, %s30_s27, [#allocation6]  }
  0x23   :  { %1227 = dma.done.wait [#allocation3], 256  }
  0x24   :  { %1228 = vsyncadd [#allocation3], 4294967040 }
  0x25   :  { %1229 = dma.done.wait [#allocation6], 64  }
  0x26   :  { %1230 = vsyncadd [#allocation6], 4294967232  ;;  %vm49_vm0 = vcmask 1043456   ;;  %v1146_v0 = vld [vmem:[#allocation5] ss:$0 sm:$0xff]  ;;  %v41_v1 = vld [vmem:[#allocation2] sm:$0xff]  ;;  %v1893_v28 = vlaneseq }
  0x27   :  { %v42_v2 = vld [vmem:[#allocation2 + $0x8] sm:$0xff]  ;;  %78 = vbcast.lane.b32.xlu1 %v1146_v0, 256  ;;  %v45_v3 = vcombine.high %v41_v1, %v41_v1  ;;  %v50_v4 = vsel %vm49_vm0, %v41_v1, 0.0  ;;  %v1147_v11 = vld [vmem:[#allocation5 + $0x1] ss:$0 sm:$0xff]  ;;  %v1237_v18 = vmov 0  }
  0x28   :  { %v46_v5 = vcombine.high %v42_v2, %v42_v2  ;;  %v55_v7 = vsel %vm49_vm0, %v42_v2, 0.0  ;;  %v1148_v12 = vld [vmem:[#allocation5 + $0x2] ss:$0 sm:$0xff]  ;;  %v1149_v13 = vld [vmem:[#allocation5 + $0x3] ss:$0 sm:$0xff]  ;;  %1158 = vset.pattern.permute.xlu0 %v1237_v18  ;;  %1157 = vset.pattern.permute.xlu1 %v1237_v18  ;;  %v1311_v31 = vshrl.u32 %v1893_v28, 7 }
  0x29   :  { %v51_v6 = vsel %vm49_vm0, %v45_v3, 0.0  ;;  %v1150_v21 = vld [vmem:[%s1891_s2] ss:$0 sm:$0xff]  ;;  %vm947_vm1 = vcmask 130112   ;;  %vm954_vm2 = vcmask 195712   ;;  %vm961_vm3 = vcmask 261312  }
  0x2a   :  { %v56_v8 = vsel %vm49_vm0, %v46_v5, 0.0  ;;  %v52_v9 = vadd.f32 %v51_v6, %v50_v4  ;;  %1898 = vst [vmem:[#allocation12_spill] sm:$0xff] %v1311_v31  ;;  %v66_v34 = vsub.s32 0, %v1311_v31  ;;  %v223_v49 = vsub.s32 1, %v1311_v31  ;;  %s1238_s2 = smov [#allocation7]  }
  0x2b   :  { %82 = vbcast.lane.b32.xlu1 %v1146_v0, 264  ;;  %v57_v10 = vadd.f32 %v56_v8, %v55_v7  ;;  %v380_v58 = vsub.s32 2, %v1311_v31  ;;  %vm968_vm4 = vcmask 326912   ;;  %vm975_vm5 = vcmask 392512   ;;  %s1136_s11 = sshll.u32 %s1238_s2, 4  ;;  %s1137_s11 = int_to_ptr.vmem [resolvable:$true] %s1136_s11 }
  0x2c   :  { %53 = vadd.xlane.f32.xlu0 %v52_v9  ;;  %vm982_vm6 = vcmask 458112   ;;  %vm989_vm7 = vcmask 523712   ;;  %vm996_vm8 = vcmask 589312   ;;  %vm1003_vm9 = vcmask 654912   ;;  %s1205_s12 = scalar_lea.vmem %s1137_s11, 32  ;;  %p1210_p3 = scmp.lt.s32.totalorder %s1137_s11, %s1137_s11 }
  0x2d   :  { %vm1010_vm10 = vcmask 720512   ;;  %vm1017_vm11 = vcmask 786112   ;;  %vm1024_vm12 = vcmask 851712   ;;  %vm1031_vm13 = vcmask 917312   ;;  %p1206_p2 = scmp.ne.s32.totalorder %s1137_s11, %s1205_s12  ;;  %p1211_p4 = scmp.lt.s32.totalorder %s1205_s12, %s1205_s12 }
  0x2e   :  { %vm1038_vm14 = vcmask 982912   ;;  %vm1045_vm15 = vcmask 1048512   ;;  %vm1126_vm0 = vcmask 1041409  }
  0x2f   :  { %90 = vbcast.lane.b32.xlu1 %v1146_v0, 280  ;;  %p1212_p5 = por %p1211_p4, %p1210_p3 }
  0x30   :  { %58 = vadd.xlane.f32.xlu0 %v57_v10 }
  0x31   :  { %p1213_p6 = pnand %p1212_p5, %p1206_p2 }
  0x33   :  { %94 = vbcast.lane.b32.xlu1 %v1146_v0, 288 }
  0x37   :  { %98 = vbcast.lane.b32.xlu1 %v1146_v0, 296 }
  0x3b   :  { %102 = vbcast.lane.b32.xlu1 %v1146_v0, 304 }
  0x3f   :  { %106 = vbcast.lane.b32.xlu1 %v1146_v0, 312 }
  0x43   :  { %110 = vbcast.lane.b32.xlu1 %v1146_v0, 320 }
  0x46   :  { %86 = vbcast.lane.b32.xlu0 %v1146_v0, 272 }
  0x47   :  { %118 = vbcast.lane.b32.xlu1 %v1146_v0, 336 }
  0x4a   :  { %114 = vbcast.lane.b32.xlu0 %v1146_v0, 328 }
  0x4b   :  { %126 = vbcast.lane.b32.xlu1 %v1146_v0, 352 }
  0x4e   :  { %122 = vbcast.lane.b32.xlu0 %v1146_v0, 344 }
  0x4f   :  { %134 = vbcast.lane.b32.xlu1 %v1146_v0, 368 }
  0x52   :  { %130 = vbcast.lane.b32.xlu0 %v1146_v0, 360 }
  0x53   :  { %235 = vbcast.lane.b32.xlu1 %v1147_v11, 256 }
  0x56   :  { %138 = vbcast.lane.b32.xlu0 %v1146_v0, 376 }
  0x57   :  { %243 = vbcast.lane.b32.xlu1 %v1147_v11, 272 }
  0x5a   :  { %239 = vbcast.lane.b32.xlu0 %v1147_v11, 264 }
  0x5b   :  { %251 = vbcast.lane.b32.xlu1 %v1147_v11, 288 }
  0x5e   :  { %247 = vbcast.lane.b32.xlu0 %v1147_v11, 280 }
  0x5f   :  { %259 = vbcast.lane.b32.xlu1 %v1147_v11, 304 }
  0x62   :  { %255 = vbcast.lane.b32.xlu0 %v1147_v11, 296 }
  0x63   :  { %267 = vbcast.lane.b32.xlu1 %v1147_v11, 320 }
  0x66   :  { %263 = vbcast.lane.b32.xlu0 %v1147_v11, 312 }
  0x67   :  { %275 = vbcast.lane.b32.xlu1 %v1147_v11, 336 }
  0x6a   :  { %271 = vbcast.lane.b32.xlu0 %v1147_v11, 328 }
  0x6b   :  { %283 = vbcast.lane.b32.xlu1 %v1147_v11, 352 }
  0x6e   :  { %279 = vbcast.lane.b32.xlu0 %v1147_v11, 344 }
  0x6f   :  { %291 = vbcast.lane.b32.xlu1 %v1147_v11, 368 }
  0x72   :  { %287 = vbcast.lane.b32.xlu0 %v1147_v11, 360 }
  0x73   :  { %392 = vbcast.lane.b32.xlu1 %v1148_v12, 256 }
  0x76   :  { %295 = vbcast.lane.b32.xlu0 %v1147_v11, 376 }
  0x77   :  { %400 = vbcast.lane.b32.xlu1 %v1148_v12, 272 }
  0x7a   :  { %396 = vbcast.lane.b32.xlu0 %v1148_v12, 264 }
  0x7b   :  { %408 = vbcast.lane.b32.xlu1 %v1148_v12, 288 }
  0x7e   :  { %404 = vbcast.lane.b32.xlu0 %v1148_v12, 280 }
  0x7f   :  { %416 = vbcast.lane.b32.xlu1 %v1148_v12, 304 }
  0x82   :  { %412 = vbcast.lane.b32.xlu0 %v1148_v12, 296 }
  0x83   :  { %424 = vbcast.lane.b32.xlu1 %v1148_v12, 320 }
  0x86   :  { %420 = vbcast.lane.b32.xlu0 %v1148_v12, 312 }
  0x87   :  { %432 = vbcast.lane.b32.xlu1 %v1148_v12, 336 }
  0x8a   :  { %428 = vbcast.lane.b32.xlu0 %v1148_v12, 328 }
  0x8b   :  { %440 = vbcast.lane.b32.xlu1 %v1148_v12, 352 }
  0x8e   :  { %436 = vbcast.lane.b32.xlu0 %v1148_v12, 344 }
  0x8f   :  { %448 = vbcast.lane.b32.xlu1 %v1148_v12, 368 }
  0x92   :  { %444 = vbcast.lane.b32.xlu0 %v1148_v12, 360 }
  0x93   :  { %549 = vbcast.lane.b32.xlu1 %v1149_v13, 256 }
  0x96   :  { %452 = vbcast.lane.b32.xlu0 %v1148_v12, 376 }
  0x97   :  { %557 = vbcast.lane.b32.xlu1 %v1149_v13, 272 }
  0x99   :  { %v1283_v14 = vpop.permute.xlu1 %78 }
  0x9a   :  { %553 = vbcast.lane.b32.xlu0 %v1149_v13, 264 }
  0x9b   :  { %565 = vbcast.lane.b32.xlu1 %v1149_v13, 288 }
  0x9d   :  { %v1285_v15 = vpop.permute.xlu1 %82 }
  0x9e   :  { %1897 = vst [vmem:[#allocation11_spill] sm:$0xff] %v1285_v15  ;;  %561 = vbcast.lane.b32.xlu0 %v1149_v13, 280 }
  0x9f   :  { %573 = vbcast.lane.b32.xlu1 %v1149_v13, 304 }
  0xa1   :  { %v1287_v16 = vpop.permute.xlu1 %90 }
  0xa2   :  { %569 = vbcast.lane.b32.xlu0 %v1149_v13, 296 }
  0xa3   :  { %581 = vbcast.lane.b32.xlu1 %v1149_v13, 320 }
  0xa5   :  { %v1289_v17 = vpop.permute.xlu1 %94 }
  0xa6   :  { %577 = vbcast.lane.b32.xlu0 %v1149_v13, 312 }
  0xa7   :  { %589 = vbcast.lane.b32.xlu1 %v1149_v13, 336 }
  0xa9   :  { %v1291_v19 = vpop.permute.xlu1 %98 }
  0xaa   :  { %585 = vbcast.lane.b32.xlu0 %v1149_v13, 328 }
  0xab   :  { %597 = vbcast.lane.b32.xlu1 %v1149_v13, 352 }
  0xad   :  { %v1293_v20 = vpop.permute.xlu1 %102 }
  0xae   :  { %593 = vbcast.lane.b32.xlu0 %v1149_v13, 344 }
  0xaf   :  { %605 = vbcast.lane.b32.xlu1 %v1149_v13, 368 }
  0xb1   :  { %v1298_v22 = vpop.permute.xlu1 %106 }
  0xb2   :  { %601 = vbcast.lane.b32.xlu0 %v1149_v13, 360 }
  0xb3   :  { %698 = vbcast.lane.b32.xlu1 %v1150_v21, 256 }
  0xb5   :  { %v1300_v23 = vpop.permute.xlu1 %110 }
  0xb6   :  { %609 = vbcast.lane.b32.xlu0 %v1149_v13, 376 }
  0xb7   :  { %706 = vbcast.lane.b32.xlu1 %v1150_v21, 272 }
  0xb9   :  { %v1302_v24 = vpop.permute.xlu1 %118  ;;  %v54_v25 = vpop.xlane.xlu0 %53 }
  0xba   :  { %702 = vbcast.lane.b32.xlu0 %v1150_v21, 264  ;;  %v1318_v35 = vmul.f32 0.00390625, %v54_v25 }
  0xbb   :  { %714 = vbcast.lane.b32.xlu1 %v1150_v21, 288 }
  0xbc   :  { %v1325_v38 = vrot.slane %v1318_v35, %v66_v34  ;;  %v1347_v53 = vrot.slane %v1318_v35, %v223_v49 }
  0xbd   :  { %v1304_v26 = vpop.permute.xlu1 %126  ;;  %v59_v27 = vpop.xlane.xlu0 %58 }
  0xbe   :  { %710 = vbcast.lane.b32.xlu0 %v1150_v21, 280  ;;  %v1340_v50 = vmul.f32 0.00390625, %v59_v27  ;;  %v160_v18 = vmul.f32 %v1289_v17, %v1325_v38  ;;  %v1399_v27 = vrot.slane %v1318_v35, %v380_v58 }
  0xbf   :  { %722 = vbcast.lane.b32.xlu1 %v1150_v21, 304 }
  0xc0   :  { %v1350_v54 = vrot.slane %v1340_v50, %v66_v34  ;;  %v1353_v55 = vrot.slane %v1340_v50, %v223_v49  ;;  %v1367_v62 = vrot.slane %v1340_v50, %v380_v58  ;;  %v162_v34 = vmul.f32 %v1293_v20, %v1325_v38 }
  0xc1   :  { %v1306_v29 = vpop.permute.xlu1 %134  ;;  %v1308_v30 = vpop.permute.xlu0 %86 }
  0xc2   :  { %718 = vbcast.lane.b32.xlu0 %v1150_v21, 296  ;;  %v170_v59 = vmul.f32 %v1306_v29, %v1325_v38  ;;  %v172_v63 = vmul.f32 %v1283_v14, %v1350_v54  ;;  %v174_v6 = vmul.f32 %v1308_v30, %v1350_v54 }
  0xc3   :  { %730 = vbcast.lane.b32.xlu1 %v1150_v21, 320 }
  0xc5   :  { %v1313_v32 = vpop.permute.xlu1 %235  ;;  %v1315_v33 = vpop.permute.xlu0 %114 }
  0xc6   :  { %726 = vbcast.lane.b32.xlu0 %v1150_v21, 312  ;;  %v329_v60 = vmul.f32 %v1313_v32, %v1353_v55 }
  0xc7   :  { %738 = vbcast.lane.b32.xlu1 %v1150_v21, 336 }
  0xc8   :  { %v361_v3 = vadd.f32 %v329_v60, %v172_v63 }
  0xc9   :  { %v1320_v36 = vpop.permute.xlu1 %243  ;;  %v1322_v37 = vpop.permute.xlu0 %122 }
  0xca   :  { %734 = vbcast.lane.b32.xlu0 %v1150_v21, 328  ;;  %v331_v4 = vmul.f32 %v1320_v36, %v1353_v55 }
  0xcb   :  { %746 = vbcast.lane.b32.xlu1 %v1150_v21, 352 }
  0xcc   :  { %v363_v12 = vadd.f32 %v331_v4, %v174_v6  ;;  %v178_v6 = vmul.f32 %v1293_v20, %v1350_v54 }
  0xcd   :  { %v252_v39 = vpop.permute.xlu1 %251  ;;  %v131_v40 = vpop.permute.xlu0 %130 }
  0xce   :  { %v1328_v41 = vmul.f32 %v131_v40, %v1325_v38  ;;  %742 = vbcast.lane.b32.xlu0 %v1150_v21, 344  ;;  %v317_v8 = vmul.f32 %v252_v39, %v1347_v53  ;;  %v333_v9 = vmul.f32 %v252_v39, %v1353_v55  ;;  %v185_v60 = vmul.f32 %v131_v40, %v1350_v54 }
  0xcf   :  { %754 = vbcast.lane.b32.xlu1 %v1150_v21, 368  ;;  %v164_v40 = vmul.f32 %v1300_v23, %v1325_v38 }
  0xd0   :  { %v349_v49 = vadd.f32 %v317_v8, %v160_v18 }
  0xd1   :  { %v260_v42 = vpop.permute.xlu1 %259  ;;  %v139_v43 = vpop.permute.xlu0 %138 }
  0xd2   :  { %v1331_v44 = vmul.f32 %v139_v43, %v1325_v38  ;;  %750 = vbcast.lane.b32.xlu0 %v1150_v21, 360  ;;  %v319_v25 = vmul.f32 %v260_v42, %v1347_v53  ;;  %v187_v8 = vmul.f32 %v139_v43, %v1350_v54 }
  0xd5   :  { %v268_v45 = vpop.permute.xlu1 %267  ;;  %v1333_v46 = vpop.permute.xlu0 %239 }
  0xd6   :  { %758 = vbcast.lane.b32.xlu0 %v1150_v21, 376  ;;  %v176_v21 = vmul.f32 %v1289_v17, %v1350_v54  ;;  %v337_v20 = vmul.f32 %v268_v45, %v1353_v55  ;;  %v330_v43 = vmul.f32 %v1333_v46, %v1353_v55 }
  0xd9   :  { %v1335_v47 = vpop.permute.xlu1 %275  ;;  %v1337_v48 = vpop.permute.xlu0 %247 }
  0xda   :  { %v332_v28 = vmul.f32 %v1337_v48, %v1353_v55 }
  0xdd   :  { %v1342_v51 = vpop.permute.xlu1 %283  ;;  %v1344_v52 = vpop.permute.xlu0 %255 }
  0xe1   :  { %v1355_v56 = vpop.permute.xlu1 %291  ;;  %v1357_v57 = vpop.permute.xlu0 %263 }
  0xe2   :  { %v327_v61 = vmul.f32 %v1355_v56, %v1347_v53 }
  0xe4   :  { %v1371_v0 = vadd.f32 %v327_v61, %v170_v59  ;;  %v365_v59 = vadd.f32 %v333_v9, %v176_v21  ;;  %v335_v61 = vmul.f32 %v260_v42, %v1353_v55 }
  0xe5   :  { %v1373_v1 = vpop.permute.xlu1 %392  ;;  %v1375_v2 = vpop.permute.xlu0 %271 }
  0xe6   :  { %v486_v5 = vmul.f32 %v1373_v1, %v1367_v62  ;;  %v367_v21 = vadd.f32 %v335_v61, %v178_v6  ;;  %v173_v61 = vmul.f32 %v1285_v15, %v1350_v54 }
  0xe8   :  { %v1383_v7 = vadd.f32 %v486_v5, %v361_v3 }
  0xe9   :  { %v1387_v10 = vpop.permute.xlu1 %400  ;;  %v1389_v11 = vpop.permute.xlu0 %279 }
  0xea   :  { %v488_v13 = vmul.f32 %v1387_v10, %v1367_v62 }
  0xec   :  { %v1403_v39 = vadd.f32 %v488_v13, %v363_v12  ;;  %v351_v12 = vadd.f32 %v319_v25, %v162_v34 }
  0xed   :  { %v409_v63 = vpop.permute.xlu1 %408  ;;  %v288_v3 = vpop.permute.xlu0 %287 }
  0xee   :  { %v474_v17 = vmul.f32 %v409_v63, %v1399_v27  ;;  %v490_v4 = vmul.f32 %v409_v63, %v1367_v62  ;;  %v326_v58 = vmul.f32 %v288_v3, %v1347_v53  ;;  %v342_v5 = vmul.f32 %v288_v3, %v1353_v55 }
  0xef   :  { %v321_v63 = vmul.f32 %v268_v45, %v1347_v53  ;;  %v166_v45 = vmul.f32 %v1302_v24, %v1325_v38 }
  0xf0   :  { %v1416_v42 = vadd.f32 %v474_v17, %v349_v49  ;;  %v1418_v9 = vadd.f32 %v490_v4, %v365_v59  ;;  %v1421_v13 = vadd.f32 %v326_v58, %v1328_v41  ;;  %v1423_v18 = vadd.f32 %v342_v5, %v185_v60 }
  0xf1   :  { %v417_v25 = vpop.permute.xlu1 %416  ;;  %v296_v34 = vpop.permute.xlu0 %295  ;;  %v180_v60 = vmul.f32 %v1300_v23, %v1350_v54  ;;  %v323_v17 = vmul.f32 %v1335_v47, %v1347_v53 }
  0xf2   :  { %1899 = vst [vmem:[#allocation13_spill] sm:$0xff] %v1416_v42  ;;  %v476_v49 = vmul.f32 %v417_v25, %v1399_v27  ;;  %v492_v59 = vmul.f32 %v417_v25, %v1367_v62  ;;  %v328_v3 = vmul.f32 %v296_v34, %v1347_v53  ;;  %v344_v41 = vmul.f32 %v296_v34, %v1353_v55 }
  0xf3   :  { %v353_v25 = vadd.f32 %v321_v63, %v164_v40  ;;  %v369_v23 = vadd.f32 %v337_v20, %v180_v60  ;;  %v339_v34 = vmul.f32 %v1335_v47, %v1353_v55  ;;  %v175_v47 = vmul.f32 %v1287_v16, %v1350_v54 }
  0xf4   :  { %v1441_v4 = vadd.f32 %v476_v49, %v351_v12  ;;  %v1443_v58 = vadd.f32 %v492_v59, %v367_v21  ;;  %v1446_v5 = vadd.f32 %v328_v3, %v1331_v44  ;;  %v1448_v6 = vadd.f32 %v344_v41, %v187_v8 }
  0xf5   :  { %v425_v42 = vpop.permute.xlu1 %424  ;;  %v1454_v15 = vpop.permute.xlu0 %396  ;;  %v362_v12 = vadd.f32 %v330_v43, %v173_v61  ;;  %v182_v8 = vmul.f32 %v1302_v24, %v1350_v54  ;;  %v355_v40 = vadd.f32 %v323_v17, %v166_v45  ;;  %v364_v3 = vadd.f32 %v332_v28, %v175_v47 }
  0xf6   :  { %v478_v21 = vmul.f32 %v425_v42, %v1399_v27  ;;  %v494_v49 = vmul.f32 %v425_v42, %v1367_v62  ;;  %v487_v44 = vmul.f32 %v1454_v15, %v1367_v62  ;;  %v325_v42 = vmul.f32 %v1342_v51, %v1347_v53 }
  0xf7   :  { %v371_v43 = vadd.f32 %v339_v34, %v182_v8  ;;  %v341_v41 = vmul.f32 %v1342_v51, %v1353_v55  ;;  %v334_v61 = vmul.f32 %v1344_v52, %v1353_v55  ;;  %v168_v28 = vmul.f32 %v1304_v26, %v1325_v38 }
  0xf8   :  { %v1464_v63 = vadd.f32 %v478_v21, %v353_v25  ;;  %v1466_v20 = vadd.f32 %v494_v49, %v369_v23  ;;  %v1468_v59 = vadd.f32 %v487_v44, %v362_v12  ;;  %v184_v23 = vmul.f32 %v1304_v26, %v1350_v54 }
  0xf9   :  { %v433_v60 = vpop.permute.xlu1 %432  ;;  %v1474_v24 = vpop.permute.xlu0 %404  ;;  %v177_v51 = vmul.f32 %v1291_v19, %v1350_v54  ;;  %v357_v49 = vadd.f32 %v325_v42, %v168_v28  ;;  %v343_v8 = vmul.f32 %v1355_v56, %v1353_v55  ;;  %v336_v47 = vmul.f32 %v1357_v57, %v1353_v55 }
  0xfa   :  { %1900 = vst [vmem:[#allocation14_spill] sm:$0xff] %v1464_v63  ;;  %1901 = vst [vmem:[#allocation15_spill] sm:$0xff] %v1468_v59  ;;  %v480_v45 = vmul.f32 %v433_v60, %v1399_v27  ;;  %v496_v17 = vmul.f32 %v433_v60, %v1367_v62  ;;  %v489_v25 = vmul.f32 %v1474_v24, %v1367_v62 }
  0xfb   :  { %v373_v44 = vadd.f32 %v341_v41, %v184_v23  ;;  %v366_v26 = vadd.f32 %v334_v61, %v177_v51  ;;  %v179_v56 = vmul.f32 %v1298_v22, %v1350_v54  ;;  %v537_v61 = vsub.s32 3, %v1311_v31 }
  0xfc   :  { %v1488_v34 = vadd.f32 %v480_v45, %v355_v40  ;;  %v1490_v12 = vadd.f32 %v496_v17, %v371_v43  ;;  %v1492_v21 = vadd.f32 %v489_v25, %v364_v3  ;;  %v186_v3 = vmul.f32 %v1306_v29, %v1350_v54 }
  0xfd   :  { %v441_v60 = vpop.permute.xlu1 %440  ;;  %v1498_v59 = vpop.permute.xlu0 %412  ;;  %v368_v25 = vadd.f32 %v336_v47, %v179_v56  ;;  %v338_v51 = vmul.f32 %v1375_v2, %v1353_v55 }
  0xfe   :  { %1902 = vst [vmem:[#allocation16_spill] sm:$0xff] %v1492_v21  ;;  %v482_v63 = vmul.f32 %v441_v60, %v1399_v27  ;;  %v498_v40 = vmul.f32 %v441_v60, %v1367_v62  ;;  %v491_v43 = vmul.f32 %v1498_v59, %v1367_v62  ;;  %v375_v17 = vadd.f32 %v343_v8, %v186_v3 }
 0x100   :  { %v1508_v42 = vadd.f32 %v482_v63, %v357_v49  ;;  %v1510_v41 = vadd.f32 %v498_v40, %v373_v44  ;;  %v1512_v45 = vadd.f32 %v491_v43, %v366_v26  ;;  %v1524_v49 = vrot.slane %v1340_v50, %v537_v61 }
 0x101   :  { %v449_v28 = vpop.permute.xlu1 %448  ;;  %v1515_v23 = vpop.permute.xlu0 %420  ;;  %v181_v44 = vmul.f32 %v1315_v33, %v1350_v54  ;;  %v324_v40 = vmul.f32 %v1389_v11, %v1347_v53  ;;  %v340_v50 = vmul.f32 %v1389_v11, %v1353_v55 }
 0x102   :  { %1903 = vst [vmem:[#allocation17_spill] sm:$0xff] %v1512_v45  ;;  %v484_v29 = vmul.f32 %v449_v28, %v1399_v27  ;;  %v500_v60 = vmul.f32 %v449_v28, %v1367_v62  ;;  %v493_v63 = vmul.f32 %v1515_v23, %v1367_v62 }
 0x103   :  { %v370_v56 = vadd.f32 %v338_v51, %v181_v44 }
 0x104   :  { %v1529_v8 = vadd.f32 %v484_v29, %v1371_v0  ;;  %v1531_v47 = vadd.f32 %v500_v60, %v375_v17  ;;  %v1533_v26 = vadd.f32 %v493_v63, %v368_v25  ;;  %v167_v17 = vmul.f32 %v1322_v37, %v1325_v38 }
 0x105   :  { %v550_v43 = vpop.permute.xlu1 %549  ;;  %v1537_v3 = vpop.permute.xlu0 %428  ;;  %v183_v25 = vmul.f32 %v1322_v37, %v1350_v54 }
 0x106   :  { %1904 = vst [vmem:[#allocation18_spill] sm:$0xff] %v1533_v26  ;;  %v643_v28 = vmul.f32 %v550_v43, %v1524_v49  ;;  %v495_v0 = vmul.f32 %v1537_v3, %v1367_v62  ;;  %v356_v51 = vadd.f32 %v324_v40, %v167_v17 }
 0x107   :  { %v372_v55 = vadd.f32 %v340_v50, %v183_v25 }
 0x108   :  { %v1548_v29 = vadd.f32 %v495_v0, %v370_v56  ;;  %v1551_v60 = vadd.f32 %v643_v28, %v1383_v7 }
 0x109   :  { %v558_v63 = vpop.permute.xlu1 %557  ;;  %v437_v44 = vpop.permute.xlu0 %436 }
 0x10a   :  { %v645_v11 = vmul.f32 %v558_v63, %v1524_v49  ;;  %v481_v31 = vmul.f32 %v437_v44, %v1399_v27  ;;  %v497_v26 = vmul.f32 %v437_v44, %v1367_v62 }
 0x10c   :  { %v1556_v45 = vadd.f32 %v481_v31, %v356_v51  ;;  %v1558_v21 = vadd.f32 %v497_v26, %v372_v55  ;;  %v1561_v37 = vadd.f32 %v645_v11, %v1403_v39 }
 0x10d   :  { %v1563_v54 = vpop.permute.xlu1 %565  ;;  %v445_v7 = vpop.permute.xlu0 %444 }
 0x10e   :  { %v647_v40 = vmul.f32 %v1563_v54, %v1524_v49  ;;  %v483_v56 = vmul.f32 %v445_v7, %v1399_v27  ;;  %v499_v50 = vmul.f32 %v445_v7, %v1367_v62 }
 0x110   :  { %v515_v28 = vadd.f32 %v483_v56, %v1421_v13  ;;  %v1571_v31 = vadd.f32 %v499_v50, %v1423_v18  ;;  %v1574_v26 = vadd.f32 %v647_v40, %v1418_v9  ;;  %v313_v40 = vmul.f32 %v1313_v32, %v1347_v53 }
 0x111   :  { %v1576_v39 = vpop.permute.xlu1 %573  ;;  %v453_v0 = vpop.permute.xlu0 %452 }
 0x112   :  { %v649_v17 = vmul.f32 %v1576_v39, %v1524_v49  ;;  %v485_v25 = vmul.f32 %v453_v0, %v1399_v27  ;;  %v501_v51 = vmul.f32 %v453_v0, %v1367_v62 }
 0x114   :  { %v1583_v44 = vadd.f32 %v485_v25, %v1446_v5  ;;  %v1586_v13 = vadd.f32 %v501_v51, %v1448_v6  ;;  %v1589_v18 = vadd.f32 %v649_v17, %v1443_v58  ;;  %v1607_v58 = vrot.slane %v1318_v35, %v537_v61 }
 0x115   :  { %v1591_v9 = vpop.permute.xlu1 %581  ;;  %v1593_v55 = vpop.permute.xlu0 %553  ;;  %v470_v17 = vmul.f32 %v1373_v1, %v1399_v27  ;;  %v315_v61 = vmul.f32 %v1320_v36, %v1347_v53 }
 0x116   :  { %1905 = vst [vmem:[#allocation19_spill] sm:$0xff] %v1586_v13  ;;  %v651_v11 = vmul.f32 %v1591_v9, %v1524_v49 }
 0x118   :  { %v1598_v7 = vadd.f32 %v651_v11, %v1466_v20  ;;  %v156_v20 = vmul.f32 %v1283_v14, %v1325_v38  ;;  %v158_v14 = vmul.f32 %v1308_v30, %v1325_v38 }
 0x119   :  { %v1600_v62 = vpop.permute.xlu1 %589  ;;  %v1602_v5 = vpop.permute.xlu0 %561 }
 0x11a   :  { %v653_v6 = vmul.f32 %v1600_v62, %v1524_v49  ;;  %v345_v32 = vadd.f32 %v313_v40, %v156_v20  ;;  %v347_v40 = vadd.f32 %v315_v61, %v158_v14  ;;  %v471_v14 = vmul.f32 %v1454_v15, %v1399_v27 }
 0x11c   :  { %v1612_v56 = vadd.f32 %v653_v6, %v1490_v12  ;;  %v627_v12 = vmul.f32 %v550_v43, %v1607_v58  ;;  %v502_v13 = vadd.f32 %v470_v17, %v345_v32 }
 0x11d   :  { %v598_v50 = vpop.permute.xlu1 %597  ;;  %v1614_v0 = vpop.permute.xlu0 %569 }
 0x11e   :  { %v639_v25 = vmul.f32 %v598_v50, %v1607_v58  ;;  %v655_v35 = vmul.f32 %v598_v50, %v1524_v49  ;;  %v472_v50 = vmul.f32 %v1387_v10, %v1399_v27  ;;  %v659_v20 = vadd.f32 %v627_v12, %v502_v13  ;;  %v1906_v13 = vld [vmem:[#allocation11_spill] sm:$0xff] }
 0x11f   :  { %v157_v12 = vmul.f32 %v1906_v13, %v1325_v38 }
 0x120   :  { %v1626_v51 = vadd.f32 %v639_v25, %v1508_v42  ;;  %v1629_v11 = vadd.f32 %v655_v35, %v1510_v41  ;;  %v629_v42 = vmul.f32 %v558_v63, %v1607_v58  ;;  %v504_v35 = vadd.f32 %v472_v50, %v347_v40 }
 0x121   :  { %v606_v1 = vpop.permute.xlu1 %605  ;;  %v1633_v6 = vpop.permute.xlu0 %577  ;;  %v628_v40 = vmul.f32 %v1593_v55, %v1607_v58 }
 0x122   :  { %v641_v36 = vmul.f32 %v606_v1, %v1607_v58  ;;  %v657_v43 = vmul.f32 %v606_v1, %v1524_v49  ;;  %v661_v32 = vadd.f32 %v629_v42, %v504_v35  ;;  %v159_v42 = vmul.f32 %v1287_v16, %v1325_v38 }
 0x123   :  { %v630_v16 = vmul.f32 %v1602_v5, %v1607_v58 }
 0x124   :  { %v1641_v41 = vadd.f32 %v641_v36, %v1529_v8  ;;  %v1644_v30 = vadd.f32 %v657_v43, %v1531_v47  ;;  %v314_v8 = vmul.f32 %v1333_v46, %v1347_v53  ;;  %v316_v36 = vmul.f32 %v1337_v48, %v1347_v53 }
 0x125   :  { %v1646_v25 = vpop.permute.xlu1 %698  ;;  %v1648_v17 = vpop.permute.xlu0 %585 }
 0x126   :  { %v776_v10 = vadd.f32 %v1646_v25, %v659_v20  ;;  %v346_v43 = vadd.f32 %v314_v8, %v157_v12 }
 0x128   :  { %841 = vperm.xlu1 %1157, %v776_v10   ;;  %v503_v15 = vadd.f32 %v471_v14, %v346_v43  ;;  %v473_v10 = vmul.f32 %v1474_v24, %v1399_v27  ;;  %v161_v24 = vmul.f32 %v1291_v19, %v1325_v38 }
 0x129   :  { %v1651_v1 = vpop.permute.xlu1 %706  ;;  %v1653_v61 = vpop.permute.xlu0 %593 }
 0x12a   :  { %v778_v63 = vadd.f32 %v1651_v1, %v661_v32  ;;  %v348_v32 = vadd.f32 %v316_v36, %v159_v42  ;;  %v660_v8 = vadd.f32 %v628_v40, %v503_v15  ;;  %v633_v40 = vmul.f32 %v1576_v39, %v1607_v58  ;;  %v1907_v42 = vld [vmem:[#allocation13_spill] sm:$0xff] }
 0x12b   :  { %v322_v39 = vmul.f32 %v1375_v2, %v1347_v53 }
 0x12c   :  { %847 = vperm.xlu1 %1157, %v778_v63   ;;  %v318_v63 = vmul.f32 %v1344_v52, %v1347_v53  ;;  %v505_v14 = vadd.f32 %v473_v10, %v348_v32 }
 0x12d   :  { %v1658_v47 = vpop.permute.xlu0 %601  ;;  %v1674_v20 = vpop.permute.xlu1 %714 }
 0x12e   :  { %v640_v50 = vmul.f32 %v1658_v47, %v1607_v58  ;;  %v350_v52 = vadd.f32 %v318_v63, %v161_v24  ;;  %v662_v15 = vadd.f32 %v630_v16, %v505_v14  ;;  %v634_v16 = vmul.f32 %v1633_v6, %v1607_v58 }
 0x130   :  { %v1670_v46 = vadd.f32 %v640_v50, %v515_v28  ;;  %v631_v28 = vmul.f32 %v1563_v54, %v1607_v58  ;;  %v475_v50 = vmul.f32 %v1498_v59, %v1399_v27  ;;  %v320_v54 = vmul.f32 %v1357_v57, %v1347_v53 }
 0x131   :  { %v1676_v35 = vpop.permute.xlu0 %609  ;;  %v1697_v43 = vpop.permute.xlu1 %722  ;;  %v163_v59 = vmul.f32 %v1298_v22, %v1325_v38  ;;  %v477_v57 = vmul.f32 %v1515_v23, %v1399_v27  ;;  %v665_v22 = vadd.f32 %v633_v40, %v1441_v4  ;;  %v165_v23 = vmul.f32 %v1315_v33, %v1325_v38 }
 0x132   :  { %v642_v48 = vmul.f32 %v1676_v35, %v1607_v58  ;;  %v663_v19 = vadd.f32 %v631_v28, %v1907_v42  ;;  %v635_v28 = vmul.f32 %v1591_v9, %v1607_v58  ;;  %v479_v53 = vmul.f32 %v1537_v3, %v1399_v27 }
 0x133   :  { %v782_v2 = vadd.f32 %v1697_v43, %v665_v22  ;;  %v637_v4 = vmul.f32 %v1600_v62, %v1607_v58  ;;  %v636_v40 = vmul.f32 %v1648_v17, %v1607_v58  ;;  %v644_v3 = vmul.f32 %v1593_v55, %v1524_v49  ;;  %v1910_v55 = vld [vmem:[#allocation16_spill] sm:$0xff] }
 0x134   :  { %v1689_v13 = vadd.f32 %v642_v48, %v1583_v44  ;;  %v632_v44 = vmul.f32 %v1614_v0, %v1607_v58  ;;  %v507_v48 = vadd.f32 %v475_v50, %v350_v52  ;;  %v780_v32 = vadd.f32 %v1674_v20, %v663_v19 }
 0x135   :  { %v703_v12 = vpop.permute.xlu0 %702  ;;  %v731_v14 = vpop.permute.xlu1 %730  ;;  %v354_v52 = vadd.f32 %v322_v39, %v165_v23 }
 0x136   :  { %v777_v36 = vadd.f32 %v703_v12, %v660_v8  ;;  %v352_v8 = vadd.f32 %v320_v54, %v163_v59  ;;  %v664_v24 = vadd.f32 %v632_v44, %v507_v48  ;;  %v1908_v54 = vld [vmem:[#allocation14_spill] sm:$0xff]  ;;  %v669_v59 = vadd.f32 %v637_v4, %v1488_v34 }
 0x137   :  { %v667_v42 = vadd.f32 %v635_v28, %v1908_v54  ;;  %v511_v44 = vadd.f32 %v479_v53, %v354_v52  ;;  %v792_v28 = vadd.f32 %v1646_v25, %v1551_v60  ;;  %v648_v34 = vmul.f32 %v1614_v0, %v1524_v49 }
 0x138   :  { %844 = vperm.xlu0 %1158, %v777_v36   ;;  %v509_v36 = vadd.f32 %v477_v57, %v352_v8  ;;  %v1909_v8 = vld [vmem:[#allocation15_spill] sm:$0xff]  ;;  %v796_v60 = vadd.f32 %v1674_v20, %v1574_v26  ;;  %v652_v0 = vmul.f32 %v1648_v17, %v1524_v49  ;;  %v800_v26 = vadd.f32 %v731_v14, %v1598_v7 }
 0x139   :  { %v711_v10 = vpop.permute.xlu0 %710  ;;  %v784_v19 = vadd.f32 %v731_v14, %v667_v42  ;;  %v739_v27 = vpop.permute.xlu1 %738  ;;  %v668_v48 = vadd.f32 %v636_v40, %v511_v44  ;;  %v676_v39 = vadd.f32 %v644_v3, %v1909_v8  ;;  %v654_v17 = vmul.f32 %v1653_v61, %v1524_v49 }
 0x13a   :  { %v779_v63 = vadd.f32 %v711_v10, %v662_v15  ;;  %v666_v33 = vadd.f32 %v634_v16, %v509_v36  ;;  %v786_v57 = vadd.f32 %v739_v27, %v669_v59  ;;  %v1911_v36 = vld [vmem:[#allocation17_spill] sm:$0xff]  ;;  %v656_v54 = vmul.f32 %v1658_v47, %v1524_v49 }
 0x13b   :  { %v793_v16 = vadd.f32 %v703_v12, %v676_v39  ;;  %v680_v53 = vadd.f32 %v648_v34, %v1911_v36  ;;  %v1912_v12 = vld [vmem:[#allocation18_spill] sm:$0xff]  ;;  %v658_v40 = vmul.f32 %v1676_v35, %v1524_v49 }
 0x13c   :  { %853 = vperm.xlu0 %1158, %v780_v32   ;;  %850 = vperm.xlu1 %1157, %v779_v63   ;;  %v646_v63 = vmul.f32 %v1602_v5, %v1524_v49  ;;  %v650_v5 = vmul.f32 %v1633_v6, %v1524_v49  ;;  %v638_v6 = vmul.f32 %v1653_v61, %v1607_v58 }
 0x13d   :  { %v719_v50 = vpop.permute.xlu0 %718  ;;  %v747_v52 = vpop.permute.xlu1 %746  ;;  %v686_v58 = vadd.f32 %v654_v17, %v1558_v21  ;;  %v688_v42 = vadd.f32 %v656_v54, %v1571_v31 }
 0x13e   :  { %v781_v9 = vadd.f32 %v719_v50, %v664_v24  ;;  %v678_v22 = vadd.f32 %v646_v63, %v1910_v55  ;;  %v794_v24 = vadd.f32 %v1651_v1, %v1561_v37  ;;  %v797_v25 = vadd.f32 %v719_v50, %v680_v53 }
 0x13f   :  { %v798_v37 = vadd.f32 %v1697_v43, %v1589_v18  ;;  %v802_v18 = vadd.f32 %v739_v27, %v1612_v56 }
 0x140   :  { %859 = vperm.xlu0 %1158, %v782_v2   ;;  %856 = vperm.xlu1 %1157, %v781_v9   ;;  %v795_v23 = vadd.f32 %v711_v10, %v678_v22  ;;  %v682_v2 = vadd.f32 %v650_v5, %v1912_v12  ;;  %v684_v10 = vadd.f32 %v652_v0, %v1548_v29 }
 0x141   :  { %v727_v38 = vpop.permute.xlu0 %726  ;;  %v670_v9 = vadd.f32 %v638_v6, %v1556_v45  ;;  %v788_v29 = vadd.f32 %v747_v52, %v1626_v51  ;;  %v804_v45 = vadd.f32 %v747_v52, %v1629_v11  ;;  %v755_v56 = vpop.permute.xlu1 %754 }
 0x142   :  { %v783_v15 = vadd.f32 %v727_v38, %v666_v33  ;;  %v799_v1 = vadd.f32 %v727_v38, %v682_v2  ;;  %v790_v21 = vadd.f32 %v755_v56, %v1641_v41  ;;  %v806_v47 = vadd.f32 %v755_v56, %v1644_v30  ;;  %v1913_v33 = vld [vmem:[#allocation19_spill] sm:$0xff] }
 0x144   :  { %865 = vperm.xlu0 %1158, %v784_v19   ;;  %862 = vperm.xlu1 %1157, %v783_v15  }
 0x145   :  { %v735_v62 = vpop.permute.xlu0 %734 }
 0x146   :  { %v785_v32 = vadd.f32 %v735_v62, %v668_v48  ;;  %v801_v20 = vadd.f32 %v735_v62, %v684_v10 }
 0x148   :  { %871 = vperm.xlu0 %1158, %v786_v57   ;;  %868 = vperm.xlu1 %1157, %v785_v32   ;;  %v1914_v32 = vlaneseq }
 0x149   :  { %v743_v50 = vpop.permute.xlu0 %742 }
 0x14a   :  { %v787_v43 = vadd.f32 %v743_v50, %v670_v9  ;;  %v803_v7 = vadd.f32 %v743_v50, %v686_v58  ;;  %v1785_v63 = vand.u32 127, %v1914_v32 }
 0x14c   :  { %892 = vperm.xlu0 %1158, %v793_v16   ;;  %889 = vperm.xlu1 %1157, %v792_v28   ;;  %v942_v8 = vadd.s32 4294967288, %v1785_v63  ;;  %v1915_v16 = vld [vmem:[#allocation12_spill] sm:$0xff]  ;;  %v956_v55 = vadd.s32 4294967272, %v1785_v63  ;;  %v949_v22 = vadd.s32 4294967280, %v1785_v63  ;;  %v963_v36 = vadd.s32 4294967264, %v1785_v63 }
 0x14d   :  { %v751_v14 = vpop.permute.xlu0 %750  ;;  %v940_v5 = vsub.s32 %v1785_v63, %v1915_v16  ;;  %v1019_v32 = vadd.s32 4294967200, %v1785_v63 }
 0x14e   :  { %v789_v61 = vadd.f32 %v751_v14, %v1670_v46  ;;  %v805_v4 = vadd.f32 %v751_v14, %v688_v42  ;;  %v690_v46 = vadd.f32 %v658_v40, %v1913_v33  ;;  %v945_v34 = vsub.s32 %v942_v8, %v1915_v16 }
 0x14f   :  { %v952_v0 = vsub.s32 %v949_v22, %v1915_v16  ;;  %v998_v40 = vadd.s32 4294967224, %v1785_v63 }
 0x150   :  { %898 = vperm.xlu0 %1158, %v795_v23   ;;  %895 = vperm.xlu1 %1157, %v794_v24  }
 0x151   :  { %v759_v51 = vpop.permute.xlu0 %758 }
 0x152   :  { %v791_v11 = vadd.f32 %v759_v51, %v1689_v13  ;;  %v807_v31 = vadd.f32 %v759_v51, %v690_v46 }
 0x154   :  { %904 = vperm.xlu0 %1158, %v797_v25   ;;  %901 = vperm.xlu1 %1157, %v796_v60   ;;  %v959_v60 = vsub.s32 %v956_v55, %v1915_v16  ;;  %v970_v25 = vadd.s32 4294967256, %v1785_v63 }
 0x156   :  { %v973_v9 = vsub.s32 %v970_v25, %v1915_v16  ;;  %v1022_v25 = vsub.s32 %v1019_v32, %v1915_v16 }
 0x158   :  { %910 = vperm.xlu0 %1158, %v799_v1   ;;  %907 = vperm.xlu1 %1157, %v798_v37   ;;  %v977_v1 = vadd.s32 4294967248, %v1785_v63 }
 0x15c   :  { %916 = vperm.xlu0 %1158, %v801_v20   ;;  %913 = vperm.xlu1 %1157, %v800_v26   ;;  %v966_v26 = vsub.s32 %v963_v36, %v1915_v16 }
 0x160   :  { %919 = vperm.xlu1 %1157, %v802_v18   ;;  %874 = vperm.xlu0 %1158, %v787_v43   ;;  %v984_v18 = vadd.s32 4294967240, %v1785_v63 }
 0x162   :  { %v987_v51 = vsub.s32 %v984_v18, %v1915_v16 }
 0x164   :  { %922 = vperm.xlu1 %1157, %v803_v7   ;;  %877 = vperm.xlu0 %1158, %v788_v29   ;;  %v980_v29 = vsub.s32 %v977_v1, %v1915_v16  ;;  %v991_v7 = vadd.s32 4294967232, %v1785_v63 }
 0x166   :  { %v994_v46 = vsub.s32 %v991_v7, %v1915_v16 }
 0x168   :  { %925 = vperm.xlu1 %1157, %v804_v45   ;;  %880 = vperm.xlu0 %1158, %v789_v61  }
 0x16c   :  { %928 = vperm.xlu1 %1157, %v805_v4   ;;  %883 = vperm.xlu0 %1158, %v790_v21  }
 0x170   :  { %931 = vperm.xlu1 %1157, %v806_v47   ;;  %886 = vperm.xlu0 %1158, %v791_v11   ;;  %v1005_v47 = vadd.s32 4294967216, %v1785_v63 }
 0x174   :  { %934 = vperm.xlu1 %1157, %v807_v31  }
 0x1a7   :  { %v842_v38 = vpop.permute.xlu1 %841 }
 0x1a8   :  { %v941_v37 = vrot.slane %v842_v38, %v940_v5 }
 0x1ab   :  { %v848_v44 = vpop.permute.xlu1 %847 }
 0x1ac   :  { %v953_v43 = vrot.slane %v848_v44, %v952_v0 }
 0x1b7   :  { %v845_v41 = vpop.permute.xlu0 %844 }
 0x1b8   :  { %v946_v53 = vrot.slane %v845_v41, %v945_v34 }
 0x1ba   :  { %v948_v50 = vsel %vm947_vm1, %v946_v53, %v941_v37 }
 0x1bb   :  { %v851_v19 = vpop.permute.xlu1 %850  ;;  %v1770_v15 = vpop.permute.xlu0 %853  ;;  %v955_v45 = vsel %vm954_vm2, %v953_v43, %v948_v50 }
 0x1bc   :  { %v960_v17 = vrot.slane %v851_v19, %v959_v60  ;;  %v967_v61 = vrot.slane %v1770_v15, %v966_v26 }
 0x1be   :  { %v962_v21 = vsel %vm961_vm3, %v960_v17, %v955_v45 }
 0x1bf   :  { %v1772_v27 = vpop.permute.xlu1 %856  ;;  %v1774_v49 = vpop.permute.xlu0 %859  ;;  %v969_v44 = vsel %vm968_vm4, %v967_v61, %v962_v21 }
 0x1c0   :  { %v974_v4 = vrot.slane %v1772_v27, %v973_v9  ;;  %v981_v41 = vrot.slane %v1774_v49, %v980_v29 }
 0x1c2   :  { %v976_v27 = vsel %vm975_vm5, %v974_v4, %v969_v44 }
 0x1c3   :  { %v1776_v35 = vpop.permute.xlu1 %862  ;;  %v1778_v30 = vpop.permute.xlu0 %865  ;;  %v983_v55 = vsel %vm982_vm6, %v981_v41, %v976_v27 }
 0x1c4   :  { %v995_v22 = vrot.slane %v1778_v30, %v994_v46 }
 0x1c7   :  { %v1780_v13 = vpop.permute.xlu1 %868  ;;  %v1782_v3 = vpop.permute.xlu0 %871 }
 0x1cb   :  { %v890_v59 = vpop.permute.xlu1 %889  ;;  %v893_v48 = vpop.permute.xlu0 %892 }
 0x1cc   :  { %v1050_v6 = vrot.slane %v890_v59, %v940_v5  ;;  %v1054_v10 = vrot.slane %v893_v48, %v945_v34  ;;  %v988_v59 = vrot.slane %v1776_v35, %v987_v51  ;;  %v1001_v48 = vsub.s32 %v998_v40, %v1915_v16 }
 0x1cd   :  { %v1026_v34 = vadd.s32 4294967192, %v1785_v63  ;;  %v1033_v35 = vadd.s32 4294967184, %v1785_v63 }
 0x1ce   :  { %v1055_v14 = vsel %vm947_vm1, %v1054_v10, %v1050_v6  ;;  %v990_v36 = vsel %vm989_vm7, %v988_v59, %v983_v55  ;;  %v1002_v53 = vrot.slane %v1780_v13, %v1001_v48 }
 0x1cf   :  { %v896_v62 = vpop.permute.xlu1 %895  ;;  %v899_v57 = vpop.permute.xlu0 %898  ;;  %v1036_v6 = vsub.s32 %v1033_v35, %v1915_v16  ;;  %v997_v13 = vsel %vm996_vm8, %v995_v22, %v990_v36 }
 0x1d0   :  { %v1059_v20 = vrot.slane %v896_v62, %v952_v0  ;;  %v1064_v54 = vrot.slane %v899_v57, %v959_v60  ;;  %v1012_v62 = vadd.s32 4294967208, %v1785_v63  ;;  %v1008_v57 = vsub.s32 %v1005_v47, %v1915_v16 }
 0x1d2   :  { %v1060_v56 = vsel %vm954_vm2, %v1059_v20, %v1055_v14  ;;  %v1015_v60 = vsub.s32 %v1012_v62, %v1915_v16  ;;  %v1009_v10 = vrot.slane %v1782_v3, %v1008_v57  ;;  %v1004_v20 = vsel %vm1003_vm9, %v1002_v53, %v997_v13 }
 0x1d3   :  { %v902_v39 = vpop.permute.xlu1 %901  ;;  %v1788_v28 = vpop.permute.xlu0 %904  ;;  %v1065_v31 = vsel %vm961_vm3, %v1064_v54, %v1060_v56 }
 0x1d4   :  { %v1069_v42 = vrot.slane %v902_v39, %v966_v26  ;;  %v1074_v38 = vrot.slane %v1788_v28, %v973_v9  ;;  %v1011_v14 = vsel %vm1010_vm10, %v1009_v10, %v1004_v20 }
 0x1d6   :  { %v1070_v19 = vsel %vm968_vm4, %v1069_v42, %v1065_v31 }
 0x1d7   :  { %v1793_v24 = vpop.permute.xlu1 %907  ;;  %v1795_v23 = vpop.permute.xlu0 %910  ;;  %v1075_v39 = vsel %vm975_vm5, %v1074_v38, %v1070_v19 }
 0x1d8   :  { %v1079_v15 = vrot.slane %v1793_v24, %v980_v29  ;;  %v1084_v28 = vrot.slane %v1795_v23, %v987_v51  ;;  %v1040_v23 = vadd.s32 4294967176, %v1785_v63 }
 0x1da   :  { %v1080_v24 = vsel %vm982_vm6, %v1079_v15, %v1075_v39 }
 0x1db   :  { %v1803_v12 = vpop.permute.xlu1 %913  ;;  %v1805_v2 = vpop.permute.xlu0 %916  ;;  %v1085_v30 = vsel %vm989_vm7, %v1084_v28, %v1080_v24 }
 0x1dc   :  { %v1089_v5 = vrot.slane %v1803_v12, %v994_v46  ;;  %v1094_v1 = vrot.slane %v1805_v2, %v1001_v48  ;;  %v1029_v12 = vsub.s32 %v1026_v34, %v1915_v16  ;;  %v1043_v2 = vsub.s32 %v1040_v23, %v1915_v16 }
 0x1de   :  { %v1090_v63 = vsel %vm996_vm8, %v1089_v5, %v1085_v30 }
 0x1df   :  { %v1812_v52 = vpop.permute.xlu1 %919  ;;  %v1814_v58 = vpop.permute.xlu0 %874  ;;  %v1095_v3 = vsel %vm1003_vm9, %v1094_v1, %v1090_v63 }
 0x1e0   :  { %v1099_v26 = vrot.slane %v1812_v52, %v1008_v57  ;;  %v1016_v50 = vrot.slane %v1814_v58, %v1015_v60 }
 0x1e2   :  { %v1100_v58 = vsel %vm1010_vm10, %v1099_v26, %v1095_v3  ;;  %v1018_v61 = vsel %vm1017_vm11, %v1016_v50, %v1011_v14 }
 0x1e3   :  { %v1827_v11 = vpop.permute.xlu1 %922  ;;  %v1829_v33 = vpop.permute.xlu0 %877 }
 0x1e4   :  { %v1104_v17 = vrot.slane %v1827_v11, %v1015_v60  ;;  %v1023_v9 = vrot.slane %v1829_v33, %v1022_v25 }
 0x1e6   :  { %v1105_v16 = vsel %vm1017_vm11, %v1104_v17, %v1100_v58  ;;  %v1025_v42 = vsel %vm1024_vm12, %v1023_v9, %v1018_v61 }
 0x1e7   :  { %v926_v8 = vpop.permute.xlu1 %925  ;;  %v881_v49 = vpop.permute.xlu0 %880 }
 0x1e8   :  { %v1109_v18 = vrot.slane %v926_v8, %v1022_v25  ;;  %v1030_v7 = vrot.slane %v881_v49, %v1029_v12 }
 0x1ea   :  { %v1110_v21 = vsel %vm1024_vm12, %v1109_v18, %v1105_v16  ;;  %v1032_v51 = vsel %vm1031_vm13, %v1030_v7, %v1025_v42 }
 0x1eb   :  { %v929_v0 = vpop.permute.xlu1 %928  ;;  %v884_v37 = vpop.permute.xlu0 %883 }
 0x1ec   :  { %v1114_v52 = vrot.slane %v929_v0, %v1029_v12  ;;  %v1037_v54 = vrot.slane %v884_v37, %v1036_v6 }
 0x1ee   :  { %v1115_v40 = vsel %vm1031_vm13, %v1114_v52, %v1110_v21  ;;  %v1039_v11 = vsel %vm1038_vm14, %v1037_v54, %v1032_v51 }
 0x1ef   :  { %v932_v43 = vpop.permute.xlu1 %931  ;;  %v887_v29 = vpop.permute.xlu0 %886 }
 0x1f0   :  { %v1119_v45 = vrot.slane %v932_v43, %v1036_v6  ;;  %v1044_v56 = vrot.slane %v887_v29, %v1043_v2 }
 0x1f2   :  { %v1120_v33 = vsel %vm1038_vm14, %v1119_v45, %v1115_v40  ;;  %v1046_v46 = vsel %vm1045_vm15, %v1044_v56, %v1039_v11 }
 0x1f3   :  { %v935_v4 = vpop.permute.xlu1 %934 }
 0x1f4   :  { %v1124_v47 = vrot.slane %v935_v4, %v1043_v2 }
 0x1f6   :  { %v1125_v31 = vsel %vm1045_vm15, %v1124_v47, %v1120_v33 }
 0x1f7   :  { %v1127_v38 = vsel %vm1126_vm0, %v1125_v31, %v1046_v46 }
 0x1f8   :  { %1129 = vst [vmem:[#allocation7] sm:$0x3] %v1127_v38 }
 0x1f9   :  { %1216 = shalt.err (!%p1213_p6)
}
 0x1fa   :  { %s1217_s15 = scalar_lea.hbm %s1892_s3, 32 }
 0x1fb   :  { %p1218_p7 = scmp.ne.s32.totalorder %s1892_s3, %s1217_s15  ;;  %p1221_p8 = scmp.lt.u32.totalorder %s1217_s15, %s1892_s3 }
 0x1fd   :  { %p1223_p9 = pnand %p1221_p8, %p1218_p7 }
 0x1ff   :  { %1226 = shalt.err (!%p1223_p9)
}
 0x200   :  { %1139 = dma.vmem_to_hbm [thread:$0]  %s1137_s11, 32, %s1892_s3, [#allocation4]  }
 0x201   :  { %1231 = dma.done.wait [#allocation4], 32  }
 0x202   :  { %1232 = vsyncadd [#allocation4], 4294967264 }
 0x203   :  { %1143 = vsyncpa [#allocation3], 1 }
 0x204   :  { %1144 = vsyncpa [#allocation6], 1 }
 0x205   :  { %1145 = vsyncpa [#allocation4], 1 }

</bundles_post_ra>
